<compile_context>
chip_gen: v6e
topology: v6e:2x2x1
jax: 0.10.0
libtpu: 0.0.40
codegen_flags: <defaults>
</compile_context>

<pallas_src>
import functools

import jax
import jax.numpy as jnp
from jax.experimental import pallas as pl
from jax.experimental.pallas import tpu as pltpu


def _round_up(x, m):
    return (x + m - 1) // m * m


def _mlp_kernel(x_ref, w1_ref, b1_ref, w2_ref, b2_ref, w3_ref, b3_ref, out_ref):
    cd = w1_ref.dtype
    # Cast activations to the compute dtype in-kernel (VPU has slack here;
    # avoids a separate HBM pad/cast pass over x in the wrapper).
    x = x_ref[...].astype(cd)
    # fc1 + ReLU (bf16 operands, f32 MXU accumulation, f32 bias add)
    h1 = jnp.dot(x, w1_ref[...], preferred_element_type=jnp.float32)
    h1 = jnp.maximum(h1 + b1_ref[...], 0.0).astype(cd)
    # fc2 + ReLU
    h2 = jnp.dot(h1, w2_ref[...], preferred_element_type=jnp.float32)
    h2 = jnp.maximum(h2 + b2_ref[...], 0.0).astype(cd)
    # fc3 (logits, no activation) -- N lane-padded to 128 so the store is
    # unmasked; stored in the compute dtype to halve the output stream.
    logits = jnp.dot(h2, w3_ref[...], preferred_element_type=jnp.float32)
    out_ref[...] = (logits + b3_ref[...]).astype(out_ref.dtype)


def _const_spec(shape):
    """BlockSpec for a parameter that is resident across the whole batch grid.
    Constant index map => fetched once; single-buffer it to halve its VMEM use."""
    try:
        return pl.BlockSpec(shape, lambda i: (0, 0), pipeline_mode=pl.Buffered(1))
    except TypeError:  # fallback for jax versions without pipeline_mode
        return pl.BlockSpec(shape, lambda i: (0, 0))


def _pick_block_b(B, *, dtype=jnp.bfloat16, max_block=1024, num_cores=2):
    # Sublane granularity of the compute-dtype output tile (16 for bf16).
    sublane = max(8, (8 * 4) // jnp.dtype(dtype).itemsize)
    # Target >= num_cores grid steps so v7x's second TensorCore gets work,
    # keep tiny batches at sublane granularity (no 128-row blow-up), and cap
    # the tile so it fits scoped VMEM comfortably on every TPU generation.
    per_core = _round_up(max(1, (B + num_cores - 1) // num_cores), sublane)
    return int(max(sublane, min(max_block, per_core)))


def prepare_mlp_params(w1, b1, w2, b2, w3, b3, *, compute_dtype=jnp.bfloat16):
    """One-time re-layout of parameters into kernel format (call at model init,
    NOT per forward): weights (in, out) (transposed vs torch) cast to
    compute_dtype; biases kept f32 as (1, out); W3/b3 lane-padded so the
    kernel's output store is lane-dense (128-wide)."""
    out_dim = w3.shape[1]
    n_pad = _round_up(out_dim, 128)
    params = (
        w1.astype(compute_dtype),
        jnp.reshape(b1, (1, -1)).astype(jnp.float32),
        w2.astype(compute_dtype),
        jnp.reshape(b2, (1, -1)).astype(jnp.float32),
        jnp.pad(w3.astype(compute_dtype), ((0, 0), (0, n_pad - out_dim))),
        jnp.pad(jnp.reshape(b3, (1, -1)).astype(jnp.float32),
                ((0, 0), (0, n_pad - out_dim))),
    )
    return params, out_dim


@functools.partial(jax.jit, static_argnames=("block_b", "out_dim", "out_dtype"))
def _mlp_forward_impl(x, w1, b1, w2, b2, w3, b3, *, block_b, out_dim, out_dtype):
    B, in_dim = x.shape
    h1_dim = w1.shape[1]
    h2_dim = w2.shape[1]
    n_pad = w3.shape[1]          # already lane-padded at prepare time
    cd = w1.dtype

    b_pad = _round_up(B, block_b)
    if b_pad != B:
        # Rows-only pad; K keeps its natural width (no lane pad / cast here).
        x = jnp.pad(x, ((0, b_pad - B), (0, 0)))

    grid = (b_pad // block_b,)

    cd_bytes = jnp.dtype(cd).itemsize
    # Advisory cost estimate from the TRUE (unpadded) problem size.
    flops = 2 * B * (in_dim * h1_dim + h1_dim * h2_dim + h2_dim * out_dim)
    bytes_accessed = (
        B * in_dim * x.dtype.itemsize                                      # x stream
        + (in_dim * h1_dim + h1_dim * h2_dim + h2_dim * n_pad) * cd_bytes  # weights
        + (h1_dim + h2_dim + n_pad) * 4                                    # biases
        + B * n_pad * cd_bytes                                             # logits out
    )

    out = pl.pallas_call(
        _mlp_kernel,
        out_shape=jax.ShapeDtypeStruct((b_pad, n_pad), cd),
        grid_spec=pltpu.PrefetchScalarGridSpec(
            num_scalar_prefetch=0,
            grid=grid,
            in_specs=[
                # activations: tiled over batch, full-K block (== array dim)
                pl.BlockSpec((block_b, in_dim), lambda i: (i, 0)),
                # parameters: full blocks, resident across the batch grid
                _const_spec((in_dim, h1_dim)),
                _const_spec((1, h1_dim)),
                _const_spec((h1_dim, h2_dim)),
                _const_spec((1, h2_dim)),
                _const_spec((h2_dim, n_pad)),
                _const_spec((1, n_pad)),
            ],
            out_specs=pl.BlockSpec((block_b, n_pad), lambda i: (i, 0)),
        ),
        compiler_params=pltpu.CompilerParams(
            # batch axis is embarrassingly parallel -> megacore sharding on v7x
            dimension_semantics=("parallel",),
            # headroom for block_b=1024 (f32 x double-buffered) on v5e's 16 MiB
            # scoped default; well under physical VMEM on all generations.
            vmem_limit_bytes=32 * 1024 * 1024,
        ),
        cost_estimate=pl.CostEstimate(
            flops=flops, transcendentals=0, bytes_accessed=bytes_accessed
        ),
    )(x, w1, b1, w2, b2, w3, b3)

    # Tiny post-kernel slice/cast: only B x out_dim elements.
    return out[:B, :out_dim].astype(out_dtype)


def mlp_forward(x, prepared_params, out_dim, *, block_b=None,
                out_dtype=jnp.float32):
    """x: (B, input_dim); prepared_params from prepare_mlp_params()."""
    B = x.shape[0]
    cd = prepared_params[0].dtype
    if block_b is None:
        block_b = _pick_block_b(B, dtype=cd)
    return _mlp_forward_impl(x, *prepared_params, block_b=block_b,
                             out_dim=out_dim, out_dtype=out_dtype)


def _init_linear(key, in_dim, out_dim):
    """PyTorch nn.Linear default init: U(-1/sqrt(fan_in), 1/sqrt(fan_in)).
    Returns W (in_dim, out_dim) (transposed vs torch) and b (1, out_dim)."""
    kw, kb = jax.random.split(key)
    bound = 1.0 / jnp.sqrt(jnp.float32(in_dim))
    w = jax.random.uniform(kw, (in_dim, out_dim), jnp.float32, -bound, bound)
    b = jax.random.uniform(kb, (1, out_dim), jnp.float32, -bound, bound)
    return w, b


def _reference_forward_f32(x, w1, b1, w2, b2, w3, b3):
    h1 = jnp.maximum(x @ w1 + b1, 0.0)
    h2 = jnp.maximum(h1 @ w2 + b2, 0.0)
    return h2 @ w3 + b3


def _reference_forward_bf16(x, w1, b1, w2, b2, w3, b3, cd=jnp.bfloat16):
    # Numerics-matched reference: bf16 operands, f32 accumulation, f32 bias
    # adds, bf16 inter-layer activations, bf16-rounded output store.
    h1 = jnp.maximum(
        jnp.dot(x.astype(cd), w1.astype(cd),
                preferred_element_type=jnp.float32) + b1, 0.0).astype(cd)
    h2 = jnp.maximum(
        jnp.dot(h1, w2.astype(cd),
                preferred_element_type=jnp.float32) + b2, 0.0).astype(cd)
    logits = jnp.dot(h2, w3.astype(cd),
                     preferred_element_type=jnp.float32) + b3
    return logits.astype(cd).astype(jnp.float32)


if __name__ == "__main__":
    # Config: input_dim=784 (flattened 28x28 MNIST), hidden dims 256/128, 10 classes.
    INPUT_DIM, HIDDEN_DIM_1, HIDDEN_DIM_2, OUTPUT_DIM = 784, 256, 128, 10
    BATCH = 8

    key = jax.random.PRNGKey(0)
    kx, k1, k2, k3 = jax.random.split(key, 4)

    x = jax.random.normal(kx, (BATCH, INPUT_DIM), jnp.float32)
    w1, b1 = _init_linear(k1, INPUT_DIM, HIDDEN_DIM_1)
    w2, b2 = _init_linear(k2, HIDDEN_DIM_1, HIDDEN_DIM_2)
    w3, b3 = _init_linear(k3, HIDDEN_DIM_2, OUTPUT_DIM)

    # One-time parameter re-layout (hoisted out of the per-call path).
    prepared, out_dim = prepare_mlp_params(w1, b1, w2, b2, w3, b3)
    prepared = jax.block_until_ready(prepared)

    logits = mlp_forward(x, prepared, out_dim)
    logits = jax.block_until_ready(logits)
    assert logits.shape == (BATCH, OUTPUT_DIM)
    assert logits.dtype == jnp.float32

    # Numerics-matched reference (bf16 operands / activations, f32 accumulation).
    ref_bf16 = _reference_forward_bf16(x, w1, b1, w2, b2, w3, b3)
    assert jnp.allclose(logits, ref_bf16, atol=1e-2, rtol=1e-2)

    # Sanity check vs. full-f32 reference with bf16-appropriate tolerance.
    ref_f32 = _reference_forward_f32(x, w1, b1, w2, b2, w3, b3)
    assert jnp.allclose(logits, ref_f32, atol=5e-2, rtol=5e-2)

    print("KERNEL_OK")
</pallas_src>

<mosaic_0001>
module attributes {stable_mosaic.version = 11 : i64} {
  func.func @_mlp_kernel(%arg0: i32, %arg1: memref<16x784xf32, #tpu.memory_space<vmem>>, %arg2: memref<784x256xbf16, #tpu.memory_space<vmem>>, %arg3: memref<1x256xf32, #tpu.memory_space<vmem>>, %arg4: memref<256x128xbf16, #tpu.memory_space<vmem>>, %arg5: memref<1x128xf32, #tpu.memory_space<vmem>>, %arg6: memref<128x128xbf16, #tpu.memory_space<vmem>>, %arg7: memref<1x128xf32, #tpu.memory_space<vmem>>, %arg8: memref<16x128xbf16, #tpu.memory_space<vmem>>) attributes {dimension_semantics = [#tpu.dimension_semantics<parallel>], iteration_bounds = array<i64: 1>, scalar_prefetch = 0 : i64, scratch_operands = 0 : i64, tpu.core_type = #tpu.core_type<tc>, window_params = [{transform_indices = @transform_0, window_bounds = array<i64: 16, 784>}, {pipeline_mode = #tpu.pipeline_mode<synchronous>, transform_indices = @transform_1, window_bounds = array<i64: 784, 256>}, {pipeline_mode = #tpu.pipeline_mode<synchronous>, transform_indices = @transform_2, window_bounds = array<i64: 1, 256>}, {pipeline_mode = #tpu.pipeline_mode<synchronous>, transform_indices = @transform_3, window_bounds = array<i64: 256, 128>}, {pipeline_mode = #tpu.pipeline_mode<synchronous>, transform_indices = @transform_4, window_bounds = array<i64: 1, 128>}, {pipeline_mode = #tpu.pipeline_mode<synchronous>, transform_indices = @transform_5, window_bounds = array<i64: 128, 128>}, {pipeline_mode = #tpu.pipeline_mode<synchronous>, transform_indices = @transform_6, window_bounds = array<i64: 1, 128>}, {transform_indices = @transform_7, window_bounds = array<i64: 16, 128>}]} {
    %c0 = arith.constant 0 : index
    %c0_0 = arith.constant 0 : index
    %0 = vector.load %arg1[%c0, %c0_0] : memref<16x784xf32, #tpu.memory_space<vmem>>, vector<16x784xf32>
    %1 = arith.truncf %0 : vector<16x784xf32> to vector<16x784xbf16>
    %c0_1 = arith.constant 0 : index
    %c0_2 = arith.constant 0 : index
    %2 = vector.load %arg2[%c0_1, %c0_2] : memref<784x256xbf16, #tpu.memory_space<vmem>>, vector<784x256xbf16>
    %cst = arith.constant dense<0.000000e+00> : vector<16x256xf32>
    %3 = tpu.matmul %1, %2, %cst {dimension_numbers = #tpu.dot_dimension_numbers<[1], [0], [0], [1], [0, 0, 1, 1], [], []>} : vector<16x784xbf16>, vector<784x256xbf16>, vector<16x256xf32> -> vector<16x256xf32>
    %c0_3 = arith.constant 0 : index
    %c0_4 = arith.constant 0 : index
    %4 = vector.load %arg3[%c0_3, %c0_4] : memref<1x256xf32, #tpu.memory_space<vmem>>, vector<1x256xf32>
    %5 = vector.broadcast %4 : vector<1x256xf32> to vector<16x256xf32>
    %6 = arith.addf %3, %5 : vector<16x256xf32>
    %cst_5 = arith.constant 0.000000e+00 : f32
    %7 = vector.broadcast %cst_5 : f32 to vector<16x256xf32>
    %8 = arith.maximumf %6, %7 : vector<16x256xf32>
    %9 = arith.truncf %8 : vector<16x256xf32> to vector<16x256xbf16>
    %c0_6 = arith.constant 0 : index
    %c0_7 = arith.constant 0 : index
    %10 = vector.load %arg4[%c0_6, %c0_7] : memref<256x128xbf16, #tpu.memory_space<vmem>>, vector<256x128xbf16>
    %cst_8 = arith.constant dense<0.000000e+00> : vector<16x128xf32>
    %11 = tpu.matmul %9, %10, %cst_8 {dimension_numbers = #tpu.dot_dimension_numbers<[1], [0], [0], [1], [0, 0, 1, 1], [], []>} : vector<16x256xbf16>, vector<256x128xbf16>, vector<16x128xf32> -> vector<16x128xf32>
    %c0_9 = arith.constant 0 : index
    %c0_10 = arith.constant 0 : index
    %12 = vector.load %arg5[%c0_9, %c0_10] : memref<1x128xf32, #tpu.memory_space<vmem>>, vector<1x128xf32>
    %13 = vector.broadcast %12 : vector<1x128xf32> to vector<16x128xf32>
    %14 = arith.addf %11, %13 : vector<16x128xf32>
    %cst_11 = arith.constant 0.000000e+00 : f32
    %15 = vector.broadcast %cst_11 : f32 to vector<16x128xf32>
    %16 = arith.maximumf %14, %15 : vector<16x128xf32>
    %17 = arith.truncf %16 : vector<16x128xf32> to vector<16x128xbf16>
    %c0_12 = arith.constant 0 : index
    %c0_13 = arith.constant 0 : index
    %18 = vector.load %arg6[%c0_12, %c0_13] : memref<128x128xbf16, #tpu.memory_space<vmem>>, vector<128x128xbf16>
    %cst_14 = arith.constant dense<0.000000e+00> : vector<16x128xf32>
    %19 = tpu.matmul %17, %18, %cst_14 {dimension_numbers = #tpu.dot_dimension_numbers<[1], [0], [0], [1], [0, 0, 1, 1], [], []>} : vector<16x128xbf16>, vector<128x128xbf16>, vector<16x128xf32> -> vector<16x128xf32>
    %c0_15 = arith.constant 0 : index
    %c0_16 = arith.constant 0 : index
    %20 = vector.load %arg7[%c0_15, %c0_16] : memref<1x128xf32, #tpu.memory_space<vmem>>, vector<1x128xf32>
    %21 = vector.broadcast %20 : vector<1x128xf32> to vector<16x128xf32>
    %22 = arith.addf %19, %21 : vector<16x128xf32>
    %23 = arith.truncf %22 : vector<16x128xf32> to vector<16x128xbf16>
    %c0_17 = arith.constant 0 : index
    %c0_18 = arith.constant 0 : index
    %24 = vector.load %arg8[%c0_17, %c0_18] : memref<16x128xbf16, #tpu.memory_space<vmem>>, vector<16x128xbf16>
    tpu.vector_store %arg8[%c0_17, %c0_18], %23 {strides = array<i32>} : memref<16x128xbf16, #tpu.memory_space<vmem>>, vector<16x128xbf16>,
    return
  }
  func.func @transform_0(%arg0: i32) -> (i32, i32) {
    %c0_i32 = arith.constant 0 : i32
    %c0_i32_0 = arith.constant 0 : i32
    return %arg0, %c0_i32 : i32, i32
  }
  func.func @transform_1(%arg0: i32) -> (i32, i32) {
    %c0_i32 = arith.constant 0 : i32
    %c0_i32_0 = arith.constant 0 : i32
    %c0_i32_1 = arith.constant 0 : i32
    return %c0_i32, %c0_i32_0 : i32, i32
  }
  func.func @transform_2(%arg0: i32) -> (i32, i32) {
    %c0_i32 = arith.constant 0 : i32
    %c0_i32_0 = arith.constant 0 : i32
    %c0_i32_1 = arith.constant 0 : i32
    return %c0_i32, %c0_i32_0 : i32, i32
  }
  func.func @transform_3(%arg0: i32) -> (i32, i32) {
    %c0_i32 = arith.constant 0 : i32
    %c0_i32_0 = arith.constant 0 : i32
    %c0_i32_1 = arith.constant 0 : i32
    return %c0_i32, %c0_i32_0 : i32, i32
  }
  func.func @transform_4(%arg0: i32) -> (i32, i32) {
    %c0_i32 = arith.constant 0 : i32
    %c0_i32_0 = arith.constant 0 : i32
    %c0_i32_1 = arith.constant 0 : i32
    return %c0_i32, %c0_i32_0 : i32, i32
  }
  func.func @transform_5(%arg0: i32) -> (i32, i32) {
    %c0_i32 = arith.constant 0 : i32
    %c0_i32_0 = arith.constant 0 : i32
    %c0_i32_1 = arith.constant 0 : i32
    return %c0_i32, %c0_i32_0 : i32, i32
  }
  func.func @transform_6(%arg0: i32) -> (i32, i32) {
    %c0_i32 = arith.constant 0 : i32
    %c0_i32_0 = arith.constant 0 : i32
    %c0_i32_1 = arith.constant 0 : i32
    return %c0_i32, %c0_i32_0 : i32, i32
  }
  func.func @transform_7(%arg0: i32) -> (i32, i32) {
    %c0_i32 = arith.constant 0 : i32
    %c0_i32_0 = arith.constant 0 : i32
    return %arg0, %c0_i32 : i32, i32
  }
}

</mosaic_0001>

<bundles_post_ra>
// kernel: _mlp_forward_impl.1
= control target key start
LH: loop header
LB: loop body
LE: loop exit
PB: predicated region body
PF: predicated region fallthrough
CT: control target
= control target key end

     0   :  { %12 = vsyncpa [#allocation3], 0  ;;  %s1740_s0 = inlined_call_operand.vmem [shape: f32[16,784], index: 0, kind: input, shape index: {}]   ;;  %s1741_s1 = inlined_call_operand.hbm [shape: bf16[784,256], index: 1, kind: input, shape index: {}]   ;;  %s1742_s2 = inlined_call_operand.vmem [shape: f32[1,256], index: 2, kind: input, shape index: {}]   ;;  %s1743_s3 = inlined_call_operand.vmem [shape: bf16[256,128], index: 3, kind: input, shape index: {}]   ;;  %s1744_s4 = inlined_call_operand.vmem [shape: f32[1,128], index: 4, kind: input, shape index: {}]   ;;  %s1745_s5 = inlined_call_operand.hbm [shape: bf16[128,128], index: 5, kind: input, shape index: {}]   ;;  %s1746_s6 = inlined_call_operand.vmem [shape: f32[1,128], index: 6, kind: input, shape index: {}]   ;;  %s1747_s7 = inlined_call_operand.vmem [shape: bf16[16,128], index: 7, kind: output, shape index: {}]  }
   0x1   :  { %13 = vsyncpa [#allocation5], 0  ;;  %s1574_s24 = smov [#allocation2]  }
   0x2   :  { %s21_s25 = sshll.u32 %s1574_s24, 4  ;;  %s22_s25 = int_to_ptr.vmem [resolvable:$true] %s21_s25 }
   0x3   :  { %s1538_s26 = scalar_lea.vmem %s22_s25, 12544  ;;  %p1543_p1 = scmp.lt.s32.totalorder %s22_s25, %s22_s25 }
   0x4   :  { %p1539_p0 = scmp.ne.s32.totalorder %s22_s25, %s1538_s26  ;;  %p1544_p2 = scmp.lt.s32.totalorder %s1538_s26, %s1538_s26 }
   0x6   :  { %p1545_p3 = por %p1544_p2, %p1543_p1 }
   0x8   :  { %p1546_p4 = pnand %p1545_p3, %p1539_p0 }
   0xa   :  { %1549 = shalt.err (!%p1546_p4)
}
   0xb   :  { %s1575_s27 = smov 128   ;;  %s1576_s28 = smov 8  }
   0xc   :  { %27 = dma.hbm_to_vmem [thread:$0]  %s1741_s1, 12544, %s22_s25, [#allocation3], %s1575_s27, %s1575_s27, %s1576_s28  }
   0xd   :  { %s1577_s8 = smov [#allocation4]  }
   0xe   :  { %s39_s9 = sshll.u32 %s1577_s8, 4  ;;  %s40_s9 = int_to_ptr.vmem [resolvable:$true] %s39_s9 }
   0xf   :  { %s1558_s10 = scalar_lea.vmem %s40_s9, 1024  ;;  %p1563_p6 = scmp.lt.s32.totalorder %s40_s9, %s40_s9 }
  0x10   :  { %p1559_p5 = scmp.ne.s32.totalorder %s40_s9, %s1558_s10  ;;  %p1564_p7 = scmp.lt.s32.totalorder %s1558_s10, %s1558_s10 }
  0x12   :  { %p1565_p8 = por %p1564_p7, %p1563_p6 }
  0x14   :  { %p1566_p9 = pnand %p1565_p8, %p1559_p5 }
  0x16   :  { %1569 = shalt.err (!%p1566_p9)
}
  0x17   :  { %s1578_s11 = smov 64   ;;  %s1579_s12 = smov 4  }
  0x18   :  { %45 = dma.hbm_to_vmem [thread:$0]  %s1745_s5, 1024, %s40_s9, [#allocation5], %s1578_s11, %s1578_s11, %s1579_s12  }
  0x19   :  { %1570 = dma.done.wait [#allocation3], 12544  }
  0x1a   :  { %1571 = vsyncadd [#allocation3], 4294954752 }
  0x1b   :  { %1572 = dma.done.wait [#allocation5], 1024  }
  0x1c   :  { %1573 = vsyncadd [#allocation5], 4294966272  ;;  %v1359_v0 = vld [vmem:[#allocation2 + $0x74] ss:$8 sps:$4 sm:$0xff]   ;;  %v1361_v1 = vld [vmem:[#allocation2 + $0x70] ss:$8 sps:$4 sm:$0xff]  }
  0x1d   :  { %680 = vmatprep.subr.bf16.mxu0 %v1359_v0  ;;  %v1362_v2 = vld [vmem:[#allocation2 + $0x174] ss:$8 sps:$4 sm:$0xff]   ;;  %v1364_v3 = vld [vmem:[#allocation2 + $0x170] ss:$8 sps:$4 sm:$0xff]   ;;  %v1365_v4 = vld [vmem:[#allocation2 + $0x64] ss:$8 sps:$4 sm:$0xff]  }
  0x1e   :  { %681 = vmatpush1.bf16.msra.mxu0 %v1361_v1  ;;  %v1367_v5 = vld [vmem:[#allocation2 + $0x60] ss:$8 sps:$4 sm:$0xff]   ;;  %723 = vmatprep.subr.bf16.mxu1 %v1362_v2  ;;  %v1368_v6 = vld [vmem:[#allocation2 + $0x164] ss:$8 sps:$4 sm:$0xff]   ;;  %v1371_v8 = vld [vmem:[#allocation2 + $0x54] ss:$8 sps:$4 sm:$0xff]  }
  0x1f   :  { %724 = vmatpush1.bf16.msra.mxu1 %v1364_v3  ;;  %682 = vmatprep.subr.bf16.mxu0 %v1365_v4  ;;  %v1370_v7 = vld [vmem:[#allocation2 + $0x160] ss:$8 sps:$4 sm:$0xff]   ;;  %v1373_v9 = vld [vmem:[#allocation2 + $0x50] ss:$8 sps:$4 sm:$0xff]   ;;  %v1374_v10 = vld [vmem:[#allocation2 + $0x154] ss:$8 sps:$4 sm:$0xff]  }
  0x20   :  { %725 = vmatprep.subr.bf16.mxu1 %v1368_v6  ;;  %v1377_v11 = vld [vmem:[#allocation2 + $0x44] ss:$8 sps:$4 sm:$0xff]   ;;  %v1376_v12 = vld [vmem:[#allocation2 + $0x150] ss:$8 sps:$4 sm:$0xff]   ;;  %v1379_v14 = vld [vmem:[#allocation2 + $0x40] ss:$8 sps:$4 sm:$0xff]  }
  0x21   :  { %v1380_v13 = vld [vmem:[#allocation2 + $0x144] ss:$8 sps:$4 sm:$0xff]   ;;  %v1383_v15 = vld [vmem:[#allocation2 + $0x34] ss:$8 sps:$4 sm:$0xff]   ;;  %v1382_v16 = vld [vmem:[#allocation2 + $0x140] ss:$8 sps:$4 sm:$0xff]  }
  0x22   :  { %683 = vmatpush1.bf16.msra.mxu0 %v1367_v5  ;;  %v1386_v17 = vld [vmem:[#allocation2 + $0x134] ss:$8 sps:$4 sm:$0xff]   ;;  %v1385_v18 = vld [vmem:[#allocation2 + $0x30] ss:$8 sps:$4 sm:$0xff]   ;;  %v1389_v19 = vld [vmem:[#allocation2 + $0x24] ss:$8 sps:$4 sm:$0xff]  }
  0x23   :  { %684 = vmatprep.subr.bf16.mxu0 %v1371_v8  ;;  %726 = vmatpush1.bf16.msra.mxu1 %v1370_v7  ;;  %v1388_v20 = vld [vmem:[#allocation2 + $0x130] ss:$8 sps:$4 sm:$0xff]   ;;  %v1392_v21 = vld [vmem:[#allocation2 + $0x124] ss:$8 sps:$4 sm:$0xff]   ;;  %v1391_v22 = vld [vmem:[#allocation2 + $0x20] ss:$8 sps:$4 sm:$0xff]  }
  0x24   :  { %727 = vmatprep.subr.bf16.mxu1 %v1374_v10  ;;  %v1395_v23 = vld [vmem:[#allocation2 + $0x14] ss:$8 sps:$4 sm:$0xff]   ;;  %v1394_v24 = vld [vmem:[#allocation2 + $0x120] ss:$8 sps:$4 sm:$0xff]   ;;  %v1397_v26 = vld [vmem:[#allocation2 + $0x10] ss:$8 sps:$4 sm:$0xff]  }
  0x25   :  { %v1398_v25 = vld [vmem:[#allocation2 + $0x114] ss:$8 sps:$4 sm:$0xff]   ;;  %v1401_v27 = vld [vmem:[#allocation2 + $0x4] ss:$8 sps:$4 sm:$0xff]   ;;  %v1400_v28 = vld [vmem:[#allocation2 + $0x110] ss:$8 sps:$4 sm:$0xff]  }
  0x26   :  { %685 = vmatpush1.bf16.msra.mxu0 %v1373_v9  ;;  %v1404_v29 = vld [vmem:[#allocation2 + $0x104] ss:$8 sps:$4 sm:$0xff]   ;;  %v1403_v30 = vld [vmem:[#allocation2] ss:$8 sps:$4 sm:$0xff]   ;;  %v1407_v31 = vld [vmem:[#allocation2 + $0xf4] ss:$8 sps:$4 sm:$0xff]  }
  0x27   :  { %686 = vmatprep.subr.bf16.mxu0 %v1377_v11  ;;  %728 = vmatpush1.bf16.msra.mxu1 %v1376_v12  ;;  %v1406_v32 = vld [vmem:[#allocation2 + $0x100] ss:$8 sps:$4 sm:$0xff]   ;;  %v1410_v33 = vld [vmem:[#allocation2 + $0x1f4] ss:$8 sps:$4 sm:$0xff]   ;;  %v1409_v34 = vld [vmem:[#allocation2 + $0xf0] ss:$8 sps:$4 sm:$0xff]  }
  0x28   :  { %729 = vmatprep.subr.bf16.mxu1 %v1380_v13  ;;  %v1413_v35 = vld [vmem:[#allocation2 + $0xe4] ss:$8 sps:$4 sm:$0xff]   ;;  %v1412_v36 = vld [vmem:[#allocation2 + $0x1f0] ss:$8 sps:$4 sm:$0xff]   ;;  %v1415_v38 = vld [vmem:[#allocation2 + $0xe0] ss:$8 sps:$4 sm:$0xff]  }
  0x29   :  { %v1416_v37 = vld [vmem:[#allocation2 + $0x1e4] ss:$8 sps:$4 sm:$0xff]   ;;  %v1419_v39 = vld [vmem:[#allocation2 + $0xd4] ss:$8 sps:$4 sm:$0xff]   ;;  %v1418_v40 = vld [vmem:[#allocation2 + $0x1e0] ss:$8 sps:$4 sm:$0xff]  }
  0x2a   :  { %687 = vmatpush1.bf16.msra.mxu0 %v1379_v14  ;;  %v1422_v41 = vld [vmem:[#allocation2 + $0x1d4] ss:$8 sps:$4 sm:$0xff]   ;;  %v1421_v42 = vld [vmem:[#allocation2 + $0xd0] ss:$8 sps:$4 sm:$0xff]   ;;  %v1425_v43 = vld [vmem:[#allocation2 + $0xc4] ss:$8 sps:$4 sm:$0xff]  }
  0x2b   :  { %688 = vmatprep.subr.bf16.mxu0 %v1383_v15  ;;  %730 = vmatpush1.bf16.msra.mxu1 %v1382_v16  ;;  %v1424_v44 = vld [vmem:[#allocation2 + $0x1d0] ss:$8 sps:$4 sm:$0xff]   ;;  %v1428_v45 = vld [vmem:[#allocation2 + $0x1c4] ss:$8 sps:$4 sm:$0xff]   ;;  %v1427_v48 = vld [vmem:[#allocation2 + $0xc0] ss:$8 sps:$4 sm:$0xff]  }
  0x2c   :  { %731 = vmatprep.subr.bf16.mxu1 %v1386_v17  ;;  %v56_v46 = vld [vmem:[%s1740_s0 + $0x8] sm:$0xff]  ;;  %v63_v47 = vld [vmem:[%s1740_s0 + $0x40] sm:$0xff]  ;;  %v1431_v50 = vld [vmem:[#allocation2 + $0xb4] ss:$8 sps:$4 sm:$0xff]   ;;  %vm676_vm0 = vcmask 130048   ;;  %vm1582_vm1 = vmmov 0  }
  0x2d   :  { %v70_v49 = vpack.c.bf16 %v63_v47, %v56_v46  ;;  %v1430_v51 = vld [vmem:[#allocation2 + $0x1c0] ss:$8 sps:$4 sm:$0xff]   ;;  %v58_v52 = vld [vmem:[%s1740_s0 + $0x18] sm:$0xff]  ;;  %v65_v53 = vld [vmem:[%s1740_s0 + $0x50] sm:$0xff] }
  0x2e   :  { %689 = vmatpush1.bf16.msra.mxu0 %v1385_v18  ;;  %v1434_v54 = vld [vmem:[#allocation2 + $0x1b4] ss:$8 sps:$4 sm:$0xff]   ;;  %v72_v55 = vpack.c.bf16 %v65_v53, %v58_v52  ;;  %v1433_v56 = vld [vmem:[#allocation2 + $0xb0] ss:$8 sps:$4 sm:$0xff]   ;;  %v1437_v57 = vld [vmem:[#allocation2 + $0xa4] ss:$8 sps:$4 sm:$0xff]  }
  0x2f   :  { %690 = vmatprep.subr.bf16.mxu0 %v1389_v19  ;;  %732 = vmatpush1.bf16.msra.mxu1 %v1388_v20  ;;  %v1436_v58 = vld [vmem:[#allocation2 + $0x1b0] ss:$8 sps:$4 sm:$0xff]   ;;  %v1440_v59 = vld [vmem:[#allocation2 + $0x1a4] ss:$8 sps:$4 sm:$0xff]   ;;  %v1439_v60 = vld [vmem:[#allocation2 + $0xa0] ss:$8 sps:$4 sm:$0xff]  }
  0x30   :  { %733 = vmatprep.subr.bf16.mxu1 %v1392_v21  ;;  %712 = vmatprep.mubr.bf16.mxu0 %v70_v49  ;;  %v1443_v61 = vld [vmem:[#allocation2 + $0x94] ss:$8 sps:$4 sm:$0xff]   ;;  %v1442_v62 = vld [vmem:[#allocation2 + $0x1a0] ss:$8 sps:$4 sm:$0xff]   ;;  %v1445_v0 = vld [vmem:[#allocation2 + $0x90] ss:$8 sps:$4 sm:$0xff]  }
  0x31   :  { %755 = vmatprep.mubr.bf16.mxu1 %v72_v55  ;;  %v1446_v63 = vld [vmem:[#allocation2 + $0x194] ss:$8 sps:$4 sm:$0xff]   ;;  %v1448_v1 = vld [vmem:[#allocation2 + $0x190] ss:$8 sps:$4 sm:$0xff]   ;;  %v1449_v2 = vld [vmem:[#allocation2 + $0x84] ss:$8 sps:$4 sm:$0xff]  }
  0x32   :  { %691 = vmatpush1.bf16.msra.mxu0 %v1391_v22  ;;  %v1451_v3 = vld [vmem:[#allocation2 + $0x80] ss:$8 sps:$4 sm:$0xff]   ;;  %v1452_v4 = vld [vmem:[#allocation2 + $0x184] ss:$8 sps:$4 sm:$0xff]   ;;  %v62_v7 = vld [vmem:[%s1740_s0 + $0x38] sm:$0xff]  ;;  %v1580_v21 = vmov 0  }
  0x33   :  { %692 = vmatprep.subr.bf16.mxu0 %v1395_v23  ;;  %734 = vmatpush1.bf16.msra.mxu1 %v1394_v24  ;;  %v55_v5 = vld [vmem:[%s1740_s0] sm:$0xff]  ;;  %v1457_v8 = vld [vmem:[#allocation2 + $0x274] ss:$8 sps:$4 sm:$0xff]   ;;  %v64_v10 = vld [vmem:[%s1740_s0 + $0x48] sm:$0xff] }
  0x34   :  { %735 = vmatprep.subr.bf16.mxu1 %v1398_v25  ;;  %v1454_v6 = vld [vmem:[#allocation2 + $0x180] ss:$8 sps:$4 sm:$0xff]   ;;  %v57_v9 = vld [vmem:[%s1740_s0 + $0x10] sm:$0xff]  ;;  %v69_v11 = vpack.c.bf16 %v62_v7, %v55_v5  ;;  %v1460_v14 = vld [vmem:[#allocation2 + $0x264] ss:$8 sps:$4 sm:$0xff]  }
  0x35   :  { %v1455_v12 = vld [vmem:[#allocation2 + $0x270] ss:$8 sps:$4 sm:$0xff]   ;;  %v71_v13 = vpack.c.bf16 %v64_v10, %v57_v9  ;;  %v1500_v15 = vld [vmem:[#allocation2 + $0x300] ss:$8 sps:$4 sm:$0xff]   ;;  %v1502_v16 = vld [vmem:[#allocation2 + $0x304] ss:$8 sps:$4 sm:$0xff]   ;;  %v176_v9 = vlaneseq }
  0x36   :  { %693 = vmatpush1.bf16.msra.mxu0 %v1397_v26  ;;  %v1458_v17 = vld [vmem:[#allocation2 + $0x260] ss:$8 sps:$4 sm:$0xff]   ;;  %v1463_v18 = vld [vmem:[#allocation2 + $0x254] ss:$8 sps:$4 sm:$0xff]   ;;  %v1461_v20 = vld [vmem:[#allocation2 + $0x250] ss:$8 sps:$4 sm:$0xff]  }
  0x37   :  { %694 = vmatprep.subr.bf16.mxu0 %v1401_v27  ;;  %736 = vmatpush1.bf16.msra.mxu1 %v1400_v28  ;;  %v60_v19 = vld [vmem:[%s1740_s0 + $0x28] sm:$0xff]  ;;  %v61_v22 = vld [vmem:[%s1740_s0 + $0x30] sm:$0xff]  ;;  %v67_v24 = vld [vmem:[%s1740_s0 + $0x60] sm:$0xff] }
  0x38   :  { %737 = vmatprep.subr.bf16.mxu1 %v1404_v29  ;;  %v68_v23 = vld [vmem:[%s1740_s0 + $0x68] sm:$0xff]  ;;  %v74_v26 = vpack.c.bf16 %v67_v24, %v60_v19  ;;  %v1469_v29 = vld [vmem:[#allocation2 + $0x234] ss:$8 sps:$4 sm:$0xff]   ;;  %v1491_v46 = vld [vmem:[#allocation2 + $0x2b0] ss:$8 sps:$4 sm:$0xff]  }
  0x39   :  { %v1466_v25 = vld [vmem:[#allocation2 + $0x244] ss:$8 sps:$4 sm:$0xff]   ;;  %v75_v27 = vpack.c.bf16 %v68_v23, %v61_v22  ;;  %v1464_v28 = vld [vmem:[#allocation2 + $0x240] ss:$8 sps:$4 sm:$0xff]   ;;  %v1499_v49 = vld [vmem:[#allocation2 + $0x294] ss:$8 sps:$4 sm:$0xff]  }
  0x3a   :  { %695 = vmatpush1.bf16.msra.mxu0 %v1403_v30  ;;  %v1467_v30 = vld [vmem:[#allocation2 + $0x230] ss:$8 sps:$4 sm:$0xff]   ;;  %v1496_v47 = vld [vmem:[#allocation2 + $0x2a4] ss:$8 sps:$4 sm:$0xff]   ;;  %v1503_v52 = vld [vmem:[#allocation2 + $0x280] ss:$8 sps:$4 sm:$0xff]  }
  0x3b   :  { %696 = vmatprep.subr.bf16.mxu0 %v1407_v31  ;;  %738 = vmatpush1.bf16.msra.mxu1 %v1406_v32  ;;  %v1472_v31 = vld [vmem:[#allocation2 + $0x224] ss:$8 sps:$4 sm:$0xff]   ;;  %v1470_v32 = vld [vmem:[#allocation2 + $0x220] ss:$8 sps:$4 sm:$0xff]  }
  0x3c   :  { %739 = vmatprep.subr.bf16.mxu1 %v1410_v33  ;;  %v1475_v33 = vld [vmem:[#allocation2 + $0x214] ss:$8 sps:$4 sm:$0xff]   ;;  %v59_v53 = vld [vmem:[%s1740_s0 + $0x20] sm:$0xff]  ;;  %v1519_v5 = vld [vmem:[%s1743_s3 + $0x8] sm:$0xff]  }
  0x3d   :  { %v1521_v7 = vld [vmem:[%s1743_s3] sm:$0xff]  }
  0x3e   :  { %697 = vmatpush2.bf16.msra.mxu0 %v1409_v34  ;;  %v1473_v34 = vld [vmem:[#allocation2 + $0x210] ss:$8 sps:$4 sm:$0xff]  }
  0x3f   :  { %698 = vmatprep.subr.bf16.mxu0 %v1413_v35  ;;  %740 = vmatpush2.bf16.msra.mxu1 %v1412_v36  ;;  %v1478_v35 = vld [vmem:[#allocation2 + $0x204] ss:$8 sps:$4 sm:$0xff]   ;;  %v1476_v36 = vld [vmem:[#allocation2 + $0x200] ss:$8 sps:$4 sm:$0xff]  }
  0x40   :  { %741 = vmatprep.subr.bf16.mxu1 %v1416_v37  ;;  %v1481_v37 = vld [vmem:[#allocation2 + $0x2f4] ss:$8 sps:$4 sm:$0xff]  }
  0x42   :  { %699 = vmatpush2.bf16.msra.mxu0 %v1415_v38  ;;  %v1479_v38 = vld [vmem:[#allocation2 + $0x2f0] ss:$8 sps:$4 sm:$0xff]  }
  0x43   :  { %700 = vmatprep.subr.bf16.mxu0 %v1419_v39  ;;  %742 = vmatpush2.bf16.msra.mxu1 %v1418_v40  ;;  %v1484_v39 = vld [vmem:[#allocation2 + $0x2e4] ss:$8 sps:$4 sm:$0xff]   ;;  %v1482_v40 = vld [vmem:[#allocation2 + $0x2e0] ss:$8 sps:$4 sm:$0xff]  }
  0x44   :  { %743 = vmatprep.subr.bf16.mxu1 %v1422_v41  ;;  %v1487_v41 = vld [vmem:[#allocation2 + $0x2d4] ss:$8 sps:$4 sm:$0xff]  }
  0x46   :  { %701 = vmatpush2.bf16.msra.mxu0 %v1421_v42  ;;  %v1485_v42 = vld [vmem:[#allocation2 + $0x2d0] ss:$8 sps:$4 sm:$0xff]  }
  0x47   :  { %702 = vmatprep.subr.bf16.mxu0 %v1425_v43  ;;  %744 = vmatpush2.bf16.msra.mxu1 %v1424_v44  ;;  %v1490_v43 = vld [vmem:[#allocation2 + $0x2c4] ss:$8 sps:$4 sm:$0xff]   ;;  %v1488_v44 = vld [vmem:[#allocation2 + $0x2c0] ss:$8 sps:$4 sm:$0xff]  }
  0x48   :  { %745 = vmatprep.subr.bf16.mxu1 %v1428_v45  ;;  %v1493_v45 = vld [vmem:[#allocation2 + $0x2b4] ss:$8 sps:$4 sm:$0xff]  }
  0x4a   :  { %703 = vmatpush2.bf16.msra.mxu0 %v1427_v48  ;;  %v1494_v48 = vld [vmem:[#allocation2 + $0x2a0] ss:$8 sps:$4 sm:$0xff]  }
  0x4b   :  { %704 = vmatprep.subr.bf16.mxu0 %v1431_v50  ;;  %746 = vmatpush2.bf16.msra.mxu1 %v1430_v51  ;;  %v1497_v50 = vld [vmem:[#allocation2 + $0x290] ss:$8 sps:$4 sm:$0xff]   ;;  %v1505_v51 = vld [vmem:[#allocation2 + $0x284] ss:$8 sps:$4 sm:$0xff]  }
  0x4c   :  { %747 = vmatprep.subr.bf16.mxu1 %v1434_v54  ;;  %v66_v54 = vld [vmem:[%s1740_s0 + $0x58] sm:$0xff] }
  0x4d   :  { %v73_v55 = vpack.c.bf16 %v66_v54, %v59_v53  ;;  %v1522_v53 = vld [vmem:[#allocation4 + $0x38] sm:$0xff]  }
  0x4e   :  { %705 = vmatpush2.bf16.msra.mxu0 %v1433_v56  ;;  %v1506_v56 = vld [vmem:[%s1743_s3 + $0x78] sm:$0xff]  }
  0x4f   :  { %706 = vmatprep.subr.bf16.mxu0 %v1437_v57  ;;  %748 = vmatpush2.bf16.msra.mxu1 %v1436_v58  ;;  %v1507_v57 = vld [vmem:[%s1743_s3 + $0x38] sm:$0xff]   ;;  %v1508_v58 = vld [vmem:[%s1743_s3 + $0x70] sm:$0xff]  }
  0x50   :  { %749 = vmatprep.subr.bf16.mxu1 %v1440_v59  ;;  %v1509_v59 = vld [vmem:[%s1743_s3 + $0x30] sm:$0xff]  }
  0x52   :  { %707 = vmatpush2.bf16.msra.mxu0 %v1439_v60  ;;  %v1510_v60 = vld [vmem:[%s1743_s3 + $0x68] sm:$0xff]  }
  0x53   :  { %708 = vmatprep.subr.bf16.mxu0 %v1443_v61  ;;  %750 = vmatpush2.bf16.msra.mxu1 %v1442_v62  ;;  %v1511_v61 = vld [vmem:[%s1743_s3 + $0x28] sm:$0xff]   ;;  %v1512_v62 = vld [vmem:[%s1743_s3 + $0x60] sm:$0xff]  }
  0x54   :  { %751 = vmatprep.subr.bf16.mxu1 %v1446_v63  ;;  %v1513_v63 = vld [vmem:[%s1743_s3 + $0x20] sm:$0xff]  }
  0x56   :  { %709 = vmatpush2.bf16.msra.mxu0 %v1445_v0  ;;  %v1514_v0 = vld [vmem:[%s1743_s3 + $0x58] sm:$0xff]  }
  0x57   :  { %710 = vmatprep.subr.bf16.mxu0 %v1449_v2  ;;  %752 = vmatpush2.bf16.msra.mxu1 %v1448_v1  ;;  %v1515_v1 = vld [vmem:[%s1743_s3 + $0x18] sm:$0xff]   ;;  %v1516_v2 = vld [vmem:[%s1743_s3 + $0x50] sm:$0xff]  }
  0x58   :  { %753 = vmatprep.subr.bf16.mxu1 %v1452_v4  ;;  %v1518_v4 = vld [vmem:[%s1743_s3 + $0x48] sm:$0xff]  }
  0x5a   :  { %711 = vmatpush2.bf16.msra.mxu0 %v1451_v3  ;;  %v1517_v3 = vld [vmem:[%s1743_s3 + $0x10] sm:$0xff]  }
  0x5b   :  { %766 = vmatprep.subr.bf16.mxu0 %v1457_v8  ;;  %754 = vmatpush2.bf16.msra.mxu1 %v1454_v6  ;;  %v1520_v6 = vld [vmem:[%s1743_s3 + $0x40] sm:$0xff]   ;;  %v1581_v8 = vmov 0.0  }
  0x5c   :  { %823 = vmatprep.subr.bf16.mxu1 %v1502_v16 }
  0x5d   :  { %713 = vmatmul.mubr.bf16.vlgmr.msra.gmra.mxu0 %v69_v11  ;;  %v177_v11 = vshrl.u32 %v176_v9, 7 }
  0x5e   :  { %767 = vmatpush1.bf16.msra.mxu0 %v1455_v12  ;;  %756 = vmatmul.mubr.bf16.vlgmr.msra.gmra.mxu1 %v71_v13 }
  0x5f   :  { %768 = vmatprep.subr.bf16.mxu0 %v1460_v14  ;;  %841 = vmatprep.mubr.bf16.mxu1 %v1580_v21  ;;  %v182_v14 = vsub.s32 1, %v177_v11  ;;  %v178_v16 = vsub.s32 0, %v177_v11 }
  0x60   :  { %824 = vmatpush1.bf16.msra.mxu1 %v1500_v15  ;;  %798 = vmatprep.mubr.bf16.mxu0 %v74_v26  ;;  %v174_v15 = vld [vmem:[%s1742_s2] sm:$0x3] }
  0x61   :  { %1299 = vmatprep.subr.bf16.mxu1 %v1506_v56  ;;  %v183_v19 = vrot.slane %v174_v15, %v182_v14  ;;  %v1524_v56 = vld [vmem:[#allocation4 + $0x28] sm:$0xff]  }
  0x62   :  { %769 = vmatpush1.bf16.msra.mxu0 %v1458_v17 }
  0x63   :  { %770 = vmatprep.subr.bf16.mxu0 %v1463_v18 }
  0x66   :  { %771 = vmatpush1.bf16.msra.mxu0 %v1461_v20  ;;  %1263 = vmatmul.mubr.msk.bf16.vlgmr.msra.gmra.mxu1 %vm676_vm0, %v75_v27  ;;  %v179_v20 = vrot.slane %v174_v15, %v178_v16 }
  0x67   :  { %772 = vmatprep.subr.bf16.mxu0 %v1466_v25  ;;  %1300 = vmatpush3.bf16.msra.mxu1 %v1507_v57  ;;  %v1525_v57 = vld [vmem:[#allocation4 + $0x20] sm:$0xff]  }
  0x68   :  { %1301 = vmatprep.subr.bf16.mxu1 %v1508_v58  ;;  %v1526_v58 = vld [vmem:[#allocation4 + $0x18] sm:$0xff]  }
  0x6a   :  { %773 = vmatpush1.bf16.msra.mxu0 %v1464_v28 }
  0x6b   :  { %774 = vmatprep.subr.bf16.mxu0 %v1469_v29  ;;  %1302 = vmatpush3.bf16.msra.mxu1 %v1509_v59  ;;  %v1527_v59 = vld [vmem:[#allocation4 + $0x10] sm:$0xff]  }
  0x6c   :  { %1303 = vmatprep.subr.bf16.mxu1 %v1510_v60  ;;  %v1528_v60 = vld [vmem:[#allocation4 + $0x8] sm:$0xff]  }
  0x6e   :  { %775 = vmatpush1.bf16.msra.mxu0 %v1467_v30 }
  0x6f   :  { %776 = vmatprep.subr.bf16.mxu0 %v1472_v31  ;;  %1304 = vmatpush3.bf16.msra.mxu1 %v1511_v61  ;;  %v1529_v61 = vld [vmem:[#allocation4] sm:$0xff]  }
  0x70   :  { %1305 = vmatprep.subr.bf16.mxu1 %v1512_v62 }
  0x72   :  { %777 = vmatpush1.bf16.msra.mxu0 %v1470_v32 }
  0x73   :  { %778 = vmatprep.subr.bf16.mxu0 %v1475_v33  ;;  %1306 = vmatpush3.bf16.msra.mxu1 %v1513_v63 }
  0x74   :  { %1307 = vmatprep.subr.bf16.mxu1 %v1514_v0 }
  0x76   :  { %779 = vmatpush1.bf16.msra.mxu0 %v1473_v34 }
  0x77   :  { %780 = vmatprep.subr.bf16.mxu0 %v1478_v35  ;;  %1308 = vmatpush3.bf16.msra.mxu1 %v1515_v1  ;;  %v1264_v1 = vld [vmem:[%s1744_s4] ss:$0 sm:$0xff] }
  0x78   :  { %1309 = vmatprep.subr.bf16.mxu1 %v1516_v2 }
  0x7a   :  { %781 = vmatpush1.bf16.msra.mxu0 %v1476_v36 }
  0x7b   :  { %782 = vmatprep.subr.bf16.mxu0 %v1481_v37  ;;  %1310 = vmatpush3.bf16.msra.mxu1 %v1517_v3 }
  0x7c   :  { %1311 = vmatprep.subr.bf16.mxu1 %v1518_v4 }
  0x7e   :  { %783 = vmatpush2.bf16.msra.mxu0 %v1479_v38 }
  0x7f   :  { %784 = vmatprep.subr.bf16.mxu0 %v1484_v39  ;;  %1312 = vmatpush3.bf16.msra.mxu1 %v1519_v5 }
  0x80   :  { %1313 = vmatprep.subr.bf16.mxu1 %v1520_v6 }
  0x82   :  { %785 = vmatpush2.bf16.msra.mxu0 %v1482_v40 }
  0x83   :  { %786 = vmatprep.subr.bf16.mxu0 %v1487_v41  ;;  %1314 = vmatpush3.bf16.msra.mxu1 %v1521_v7 }
  0x84   :  { %1330 = vmatprep.subr.bf16.mxu1 %v1581_v8 }
  0x86   :  { %787 = vmatpush2.bf16.msra.mxu0 %v1485_v42 }
  0x87   :  { %788 = vmatprep.subr.bf16.mxu0 %v1490_v43 }
  0x8a   :  { %789 = vmatpush2.bf16.msra.mxu0 %v1488_v44 }
  0x8b   :  { %790 = vmatprep.subr.bf16.mxu0 %v1493_v45 }
  0x8e   :  { %791 = vmatpush2.bf16.msra.mxu0 %v1491_v46 }
  0x8f   :  { %792 = vmatprep.subr.bf16.mxu0 %v1496_v47 }
  0x92   :  { %793 = vmatpush2.bf16.msra.mxu0 %v1494_v48 }
  0x93   :  { %794 = vmatprep.subr.bf16.mxu0 %v1499_v49 }
  0x96   :  { %795 = vmatpush2.bf16.msra.mxu0 %v1497_v50 }
  0x97   :  { %796 = vmatprep.subr.bf16.mxu0 %v1505_v51 }
  0x9a   :  { %797 = vmatpush2.bf16.msra.mxu0 %v1503_v52 }
  0x9d   :  { %799 = vmatmul.mubr.bf16.vlgmr.msra.gmra.mxu0 %v73_v55  ;;  %v1523_v55 = vld [vmem:[#allocation4 + $0x30] sm:$0xff]  }
 0x11d   :  { %v714_v12 = vpop.f32.mrf.mxu0 }
 0x11e   :  { %v757_v10 = vpop.f32.mrf.mxu1  ;;  %v715_v25 = vadd.f32 %v714_v12, %v179_v20 }
 0x11f   :  { %v716_v17 = vpop.f32.mrf.mxu0 }
 0x120   :  { %v759_v13 = vpop.f32.mrf.mxu1  ;;  %v717_v24 = vadd.f32 %v716_v17, %v183_v19  ;;  %v758_v32 = vadd.f32 %v757_v10, %v715_v25 }
 0x121   :  { %v718_v21 = vpop.f32.mrf.mxu0 }
 0x122   :  { %v761_v18 = vpop.f32.mrf.mxu1  ;;  %v719_v27 = vadd.f32 %v718_v21, %v179_v20  ;;  %v760_v30 = vadd.f32 %v759_v13, %v717_v24 }
 0x123   :  { %v720_v26 = vpop.f32.mrf.mxu0 }
 0x124   :  { %v763_v22 = vpop.f32.mrf.mxu1  ;;  %v721_v31 = vadd.f32 %v720_v26, %v183_v19  ;;  %v762_v34 = vadd.f32 %v761_v18, %v719_v27 }
 0x126   :  { %v843_v23 = vpop.f32.mrf.mxu1  ;;  %v764_v39 = vadd.f32 %v763_v22, %v721_v31 }
 0x128   :  { %v845_v28 = vpop.f32.mrf.mxu1 }
 0x12a   :  { %v847_v37 = vpop.f32.mrf.mxu1 }
 0x12c   :  { %v849_v46 = vpop.f32.mrf.mxu1 }
 0x15d   :  { %v800_v29 = vpop.f32.mrf.mxu0 }
 0x15e   :  { %v801_v36 = vadd.f32 %v800_v29, %v758_v32 }
 0x15f   :  { %v802_v33 = vpop.f32.mrf.mxu0 }
 0x160   :  { %v803_v35 = vadd.f32 %v802_v33, %v760_v30  ;;  %v844_v45 = vadd.f32 %v843_v23, %v801_v36 }
 0x161   :  { %v804_v38 = vpop.f32.mrf.mxu0 }
 0x162   :  { %v805_v40 = vadd.f32 %v804_v38, %v762_v34  ;;  %v846_v42 = vadd.f32 %v845_v28, %v803_v35  ;;  %v852_v51 = vmax.f32 %v844_v45, 0.0 }
 0x163   :  { %v806_v41 = vpop.f32.mrf.mxu0 }
 0x164   :  { %v848_v43 = vadd.f32 %v847_v37, %v805_v40  ;;  %v807_v44 = vadd.f32 %v806_v41, %v764_v39  ;;  %v853_v49 = vmax.f32 %v846_v42, 0.0 }
 0x166   :  { %v850_v47 = vadd.f32 %v849_v46, %v807_v44  ;;  %v854_v48 = vmax.f32 %v848_v43, 0.0 }
 0x168   :  { %v855_v50 = vmax.f32 %v850_v47, 0.0  ;;  %v856_v54 = vpack.c.bf16 %v854_v48, %v852_v51 }
 0x16a   :  { %v857_v52 = vpack.c.bf16 %v855_v50, %v853_v49 }
 0x16c   :  { %1025 = vmatprep.mubr.bf16.mxu1 %v857_v52 }
 0x16d   :  { %1026 = vmatmul.mubr.bf16.vlgmr.msra.gmra.mxu1 %v856_v54 }
 0x16e   :  { %1331 = vmatpush3.bf16.msra.mxu1 %v1522_v53  ;;  %1346 = vmatprep.mubr.msk.bf16.mxu1 %vm1582_vm1, %v1581_v8 }
 0x16f   :  { %1332 = vmatprep.subr.bf16.mxu1 %v1581_v8 }
 0x172   :  { %1333 = vmatpush3.bf16.msra.mxu1 %v1523_v55 }
 0x173   :  { %1334 = vmatprep.subr.bf16.mxu1 %v1581_v8 }
 0x176   :  { %1335 = vmatpush3.bf16.msra.mxu1 %v1524_v56 }
 0x177   :  { %1336 = vmatprep.subr.bf16.mxu1 %v1581_v8 }
 0x17a   :  { %1337 = vmatpush3.bf16.msra.mxu1 %v1525_v57 }
 0x17b   :  { %1338 = vmatprep.subr.bf16.mxu1 %v1581_v8 }
 0x17e   :  { %1339 = vmatpush3.bf16.msra.mxu1 %v1526_v58 }
 0x17f   :  { %1340 = vmatprep.subr.bf16.mxu1 %v1581_v8 }
 0x182   :  { %1341 = vmatpush3.bf16.msra.mxu1 %v1527_v59 }
 0x183   :  { %1342 = vmatprep.subr.bf16.mxu1 %v1581_v8 }
 0x186   :  { %1343 = vmatpush3.bf16.msra.mxu1 %v1528_v60 }
 0x187   :  { %1344 = vmatprep.subr.bf16.mxu1 %v1581_v8  ;;  %v1281_v8 = vld [vmem:[%s1746_s6] ss:$0 sm:$0xff] }
 0x18a   :  { %1345 = vmatpush3.bf16.msra.mxu1 %v1529_v61 }
 0x22d   :  { %v1315_v62 = vpop.f32.mrf.mxu1 }
 0x22f   :  { %v1316_v63 = vpop.f32.mrf.mxu1 }
 0x230   :  { %v1317_v0 = vadd.f32 %v1316_v63, %v1315_v62 }
 0x231   :  { %v1318_v2 = vpop.f32.mrf.mxu1 }
 0x232   :  { %v1028_v4 = vadd.f32 %v1317_v0, %v1264_v1 }
 0x233   :  { %v1319_v3 = vpop.f32.mrf.mxu1 }
 0x234   :  { %v1320_v5 = vadd.f32 %v1319_v3, %v1318_v2  ;;  %v1034_v7 = vmax.f32 %v1028_v4, 0.0 }
 0x236   :  { %v1031_v6 = vadd.f32 %v1320_v5, %v1264_v1 }
 0x238   :  { %v1035_v9 = vmax.f32 %v1031_v6, 0.0 }
 0x23a   :  { %v1036_v10 = vpack.c.bf16 %v1035_v9, %v1034_v7 }
 0x23c   :  { %1347 = vmatmul.mubr.bf16.vlgmr.msra.gmra.mxu1 %v1036_v10 }
 0x2fc   :  { %v1142_v11 = vpop.f32.mrf.mxu1 }
 0x2fd   :  { %v1143_v14 = vadd.f32 %v1281_v8, %v1142_v11 }
 0x2fe   :  { %v1348_v12 = vpop.f32.mrf.mxu1 }
 0x300   :  { %v1145_v13 = vpop.f32.mrf.mxu1 }
 0x301   :  { %v1146_v15 = vadd.f32 %v1281_v8, %v1145_v13 }
 0x302   :  { %v1349_v16 = vpop.f32.mrf.mxu1 }
 0x303   :  { %v1297_v17 = vpack.c.bf16 %v1146_v15, %v1143_v14 }
 0x305   :  { %1298 = vst [vmem:[%s1747_s7] sm:$0xff] %v1297_v17  }
 0x306   :  { %1163 = vsyncpa [#allocation3], 1 }
 0x307   :  { %1164 = vsyncpa [#allocation5], 1 }

</bundles_post_ra>
